<compile_context>
chip_gen: v6e
topology: v6e:2x2x1
jax: 0.10.0
libtpu: 0.0.40
codegen_flags: <defaults>
</compile_context>

<pallas_src>
import functools

import jax
import jax.numpy as jnp
from jax.experimental import pallas as pl
from jax.experimental.pallas import tpu as pltpu


def _round_up(n, m):
    return ((n + m - 1) // m) * m


def _mlp_kernel(x_ref, w1_ref, b1_ref, w2_ref, b2_ref, o_ref):
    # Layer 1 (packed, block-diagonal): [R, P*D] @ [P*D, P*H] -> [R, P*H].
    # f32 in / f32 accumulation on the MXU (compute has huge slack; the kernel
    # is HBM-bound on x).
    h = jnp.dot(x_ref[...], w1_ref[...], preferred_element_type=jnp.float32)
    h = h + b1_ref[...]                                   # broadcast bias
    # Sigmoid as 0.5*tanh(0.5*h)+0.5: one exact EUP pass, f32 (v5e-safe).
    h = 0.5 * jnp.tanh(0.5 * h) + 0.5                      # [R, P*H]
    # Layer 2 (packed, block-diagonal): [R, P*H] @ [P*H, P] -> [R, P] on MXU.
    y = jnp.dot(h, w2_ref[...], preferred_element_type=jnp.float32)
    o_ref[...] = (y + b2_ref[0, 0]).astype(o_ref.dtype)


def ranknet_forward(x, w1, b1, w2, b2, *, samples_per_row=8, rows_per_tile=8192):
    """x: [B, D] f32; w1: [D, H]; b1: [H]; w2: [H, 1]; b2: [1] -> [B, 1] f32."""
    B, D = x.shape
    H = w1.shape[1]
    assert w1.shape == (D, H)
    assert b1.shape == (H,)
    assert w2.shape == (H, 1)

    P = int(samples_per_row)
    assert P >= 1

    # Pack P samples per row.  Only pads (one copy) when B % P != 0; the
    # subsequent reshape of a contiguous row-major array is free.
    Bp = _round_up(B, P)
    xw = x.astype(jnp.float32)
    if Bp != B:
        xw = jnp.pad(xw, ((0, Bp - B), (0, 0)))
    Rp = Bp // P
    x_packed = xw.reshape(Rp, P * D)                       # [Rp, P*D], free

    # Tiny, VMEM-resident packed weights (built once per call; negligible).
    eye = jnp.eye(P, dtype=jnp.float32)
    w1_bd = jnp.kron(eye, w1.astype(jnp.float32))          # [P*D, P*H]
    w2_bd = jnp.kron(eye, w2.astype(jnp.float32))          # [P*H, P]
    b1_row = jnp.tile(jnp.asarray(b1, jnp.float32).reshape(1, H), (1, P))
    b2_s = jnp.asarray(b2, jnp.float32).reshape(1, 1)

    # Packed-row tile: multiple of 8 sublanes, or the full (small) extent.
    if Rp <= rows_per_tile:
        rt = Rp
    else:
        rt = max(8, (rows_per_tile // 8) * 8)
    num_tiles = pl.cdiv(Rp, rt)                            # ragged last tile OK

    cost = pl.CostEstimate(
        flops=2 * Rp * (P * D) * (P * H) + 2 * Rp * (P * H) * P,
        transcendentals=Rp * P * H,
        bytes_accessed=(Rp * P * D * 4 + Rp * P * 4
                        + (P * D) * (P * H) * 4 + (P * H) * P * 4
                        + P * H * 4 + 4),
    )

    out = pl.pallas_call(
        _mlp_kernel,
        out_shape=jax.ShapeDtypeStruct((Rp, P), jnp.float32),
        grid=(num_tiles,),
        in_specs=[
            pl.BlockSpec((rt, P * D), lambda i: (i, 0)),        # streamed x tile
            pl.BlockSpec((P * D, P * H), lambda i: (0, 0)),     # w1 block-diag, pinned
            pl.BlockSpec((1, P * H), lambda i: (0, 0)),         # b1 tiled row, pinned
            pl.BlockSpec((P * H, P), lambda i: (0, 0)),         # w2 block-diag, pinned
            pl.BlockSpec(memory_space=pltpu.MemorySpace.SMEM),  # b2 scalar
        ],
        out_specs=pl.BlockSpec((rt, P), lambda i: (i, 0)),
        compiler_params=pltpu.CompilerParams(
            dimension_semantics=("parallel",),
            vmem_limit_bytes=32 * 1024 * 1024,
        ),
        cost_estimate=cost,
    )(x_packed, w1_bd, b1_row, w2_bd, b2_s)

    # [Rp, P] -> [Bp, 1] is a free reshape of the packed sample order.
    return out.reshape(Bp, 1)[:B]


def _reference(x, w1, b1, w2, b2):
    h = jax.nn.sigmoid(x @ w1 + b1.reshape(1, -1))
    return h @ w2 + b2.reshape(1, 1)


if __name__ == "__main__":
    # D=32 features, hidden=10 (matches the module).  B=100 with P=8 and
    # rows_per_tile=8 exercises batch padding (100 -> 104), multiple grid
    # steps (ceil(13/8) = 2) and the ragged last tile's masked boundary.
    B, D, H = 100, 32, 10
    key = jax.random.PRNGKey(0)
    kx, k1, k2, k3, k4 = jax.random.split(key, 5)

    x = jax.random.normal(kx, (B, D), dtype=jnp.float32)
    # Deterministic parameter init (uniform, roughly PyTorch's default scale).
    w1 = jax.random.uniform(k1, (D, H), jnp.float32, -(D ** -0.5), D ** -0.5)
    b1 = jax.random.uniform(k2, (H,), jnp.float32, -(D ** -0.5), D ** -0.5)
    w2 = jax.random.uniform(k3, (H, 1), jnp.float32, -(H ** -0.5), H ** -0.5)
    b2 = jax.random.uniform(k4, (1,), jnp.float32, -(H ** -0.5), H ** -0.5)

    fwd = jax.jit(functools.partial(ranknet_forward,
                                    samples_per_row=8, rows_per_tile=8))
    out = jax.block_until_ready(fwd(x, w1, b1, w2, b2))

    ref = _reference(x, w1, b1, w2, b2)
    assert out.shape == (B, 1)
    # Fully f32 compute path (f32 MXU accumulation, exact tanh-based sigmoid).
    assert jnp.allclose(out, ref, atol=1e-3, rtol=1e-3), "mismatch vs reference"

    print("KERNEL_OK")
</pallas_src>

<mosaic_0001>
module attributes {stable_mosaic.version = 11 : i64} {
  func.func @_mlp_kernel(%arg0: i32, %arg1: memref<8x256xf32, #tpu.memory_space<vmem>>, %arg2: memref<256x80xf32, #tpu.memory_space<vmem>>, %arg3: memref<1x80xf32, #tpu.memory_space<vmem>>, %arg4: memref<80x8xf32, #tpu.memory_space<vmem>>, %arg5: memref<1x1xf32, #tpu.memory_space<smem>>, %arg6: memref<8x8xf32, #tpu.memory_space<vmem>>) attributes {dimension_semantics = [#tpu.dimension_semantics<parallel>], iteration_bounds = array<i64: 2>, scalar_prefetch = 0 : i64, scratch_operands = 0 : i64, tpu.core_type = #tpu.core_type<tc>, window_params = [{transform_indices = @transform_0, window_bounds = array<i64: 8, 256>}, {pipeline_mode = #tpu.pipeline_mode<synchronous>, transform_indices = @transform_1, window_bounds = array<i64: 256, 80>}, {pipeline_mode = #tpu.pipeline_mode<synchronous>, transform_indices = @transform_2, window_bounds = array<i64: 1, 80>}, {pipeline_mode = #tpu.pipeline_mode<synchronous>, transform_indices = @transform_3, window_bounds = array<i64: 80, 8>}, {transform_indices = @transform_4, window_bounds = array<i64: 1, 1>}, {transform_indices = @transform_5, window_bounds = array<i64: 8, 8>}]} {
    %c0 = arith.constant 0 : index
    %c0_0 = arith.constant 0 : index
    %0 = vector.load %arg1[%c0, %c0_0] : memref<8x256xf32, #tpu.memory_space<vmem>>, vector<8x256xf32>
    %c0_1 = arith.constant 0 : index
    %c0_2 = arith.constant 0 : index
    %1 = vector.load %arg2[%c0_1, %c0_2] : memref<256x80xf32, #tpu.memory_space<vmem>>, vector<256x80xf32>
    %cst = arith.constant dense<0.000000e+00> : vector<8x80xf32>
    %2 = tpu.matmul %0, %1, %cst {dimension_numbers = #tpu.dot_dimension_numbers<[1], [0], [0], [1], [0, 0, 1, 1], [], []>} : vector<8x256xf32>, vector<256x80xf32>, vector<8x80xf32> -> vector<8x80xf32>
    %c0_3 = arith.constant 0 : index
    %c0_4 = arith.constant 0 : index
    %3 = vector.load %arg3[%c0_3, %c0_4] : memref<1x80xf32, #tpu.memory_space<vmem>>, vector<1x80xf32>
    %4 = vector.broadcast %3 : vector<1x80xf32> to vector<8x80xf32>
    %5 = arith.addf %2, %4 : vector<8x80xf32>
    %cst_5 = arith.constant 5.000000e-01 : f32
    %6 = vector.broadcast %cst_5 : f32 to vector<8x80xf32>
    %7 = arith.mulf %6, %5 : vector<8x80xf32>
    %8 = math.tanh %7 : vector<8x80xf32>
    %cst_6 = arith.constant 5.000000e-01 : f32
    %9 = vector.broadcast %cst_6 : f32 to vector<8x80xf32>
    %10 = arith.mulf %9, %8 : vector<8x80xf32>
    %cst_7 = arith.constant 5.000000e-01 : f32
    %11 = vector.broadcast %cst_7 : f32 to vector<8x80xf32>
    %12 = arith.addf %10, %11 : vector<8x80xf32>
    %c0_8 = arith.constant 0 : index
    %c0_9 = arith.constant 0 : index
    %13 = vector.load %arg4[%c0_8, %c0_9] : memref<80x8xf32, #tpu.memory_space<vmem>>, vector<80x8xf32>
    %cst_10 = arith.constant dense<0.000000e+00> : vector<8x8xf32>
    %14 = tpu.matmul %12, %13, %cst_10 {dimension_numbers = #tpu.dot_dimension_numbers<[1], [0], [0], [1], [0, 0, 1, 1], [], []>} : vector<8x80xf32>, vector<80x8xf32>, vector<8x8xf32> -> vector<8x8xf32>
    %c0_11 = arith.constant 0 : index
    %c0_12 = arith.constant 0 : index
    %15 = memref.load %arg5[%c0_11, %c0_12] : memref<1x1xf32, #tpu.memory_space<smem>>
    %16 = vector.broadcast %15 : f32 to vector<8x8xf32>
    %17 = arith.addf %14, %16 : vector<8x8xf32>
    %c0_13 = arith.constant 0 : index
    %c0_14 = arith.constant 0 : index
    %18 = vector.load %arg6[%c0_13, %c0_14] : memref<8x8xf32, #tpu.memory_space<vmem>>, vector<8x8xf32>
    tpu.vector_store %arg6[%c0_13, %c0_14], %17 {strides = array<i32>} : memref<8x8xf32, #tpu.memory_space<vmem>>, vector<8x8xf32>,
    return
  }
  func.func @transform_0(%arg0: i32) -> (i32, i32) {
    %c0_i32 = arith.constant 0 : i32
    %c0_i32_0 = arith.constant 0 : i32
    return %arg0, %c0_i32 : i32, i32
  }
  func.func @transform_1(%arg0: i32) -> (i32, i32) {
    %c0_i32 = arith.constant 0 : i32
    %c0_i32_0 = arith.constant 0 : i32
    %c0_i32_1 = arith.constant 0 : i32
    return %c0_i32, %c0_i32_0 : i32, i32
  }
  func.func @transform_2(%arg0: i32) -> (i32, i32) {
    %c0_i32 = arith.constant 0 : i32
    %c0_i32_0 = arith.constant 0 : i32
    %c0_i32_1 = arith.constant 0 : i32
    return %c0_i32, %c0_i32_0 : i32, i32
  }
  func.func @transform_3(%arg0: i32) -> (i32, i32) {
    %c0_i32 = arith.constant 0 : i32
    %c0_i32_0 = arith.constant 0 : i32
    %c0_i32_1 = arith.constant 0 : i32
    return %c0_i32, %c0_i32_0 : i32, i32
  }
  func.func @transform_4(%arg0: i32) -> (i32, i32) {
    %c0_i32 = arith.constant 0 : i32
    %c0_i32_0 = arith.constant 0 : i32
    %c0_i32_1 = arith.constant 0 : i32
    return %c0_i32, %c0_i32_0 : i32, i32
  }
  func.func @transform_5(%arg0: i32) -> (i32, i32) {
    %c0_i32 = arith.constant 0 : i32
    %c0_i32_0 = arith.constant 0 : i32
    return %arg0, %c0_i32 : i32, i32
  }
}

</mosaic_0001>

<bundles_post_ra>
// kernel: ranknet_forward.1
= control target key start
LH: loop header
LB: loop body
LE: loop exit
PB: predicated region body
PF: predicated region fallthrough
CT: control target
= control target key end

     0   :  { %s617_s20 = smov 0   ;;  %s771_s0 = inlined_call_operand.vmem [shape: f32[13,256], index: 0, kind: input, shape index: {}]   ;;  %s772_s1 = inlined_call_operand.vmem [shape: f32[256,80], index: 1, kind: input, shape index: {}]   ;;  %s773_s2 = inlined_call_operand.vmem [shape: f32[1,80], index: 2, kind: input, shape index: {}]   ;;  %s774_s3 = inlined_call_operand.vmem [shape: f32[80,8], index: 3, kind: input, shape index: {}]   ;;  %s775_s4 = inlined_call_operand.<no memory space> [shape: f32[1,1], index: 4, kind: input, shape index: {}]   ;;  %s776_s5 = inlined_call_operand.vmem [shape: f32[13,8], index: 5, kind: output, shape index: {}]  }
   0x1   :  { %10 = sst [smem:[#allocation2]] %s775_s4 }
   0x2 LB: > { %s480_s21 = sadd.s32 4294967295, %s580_s20   ;;  %p484_p0 = scmp.ge.s32.totalorder %s580_s20, 1  ;;  %s580_s20 = sphi %s617_s20, %s16_s20  }
   0x3   : > { %p188_p1 = scmp.lt.s32.totalorder %s580_s20, 3 }
   0x5   : > { %p189_p2 = pnand %p484_p0, %p188_p1 }
   0x6   : > { %p215_p3 = scmp.lt.s32.totalorder (!%p189_p2), %s480_s21, 1  ;;  %s349_s15 = sld [smem:[#allocation2]] (!%p189_p2) }
   0x7   : > { %192 = sbr.rel (%p189_p2) target bundleno = 460 (0x1cc), region = 40 }
   0xc   : > { %v257_v0 = vld [vmem:[%s772_s1 + $0xf8] sm:$0xff]  ;;  %v256_v2 = vld [vmem:[%s772_s1 + $0xf0] sm:$0xff]  ;;  %v255_v4 = vld [vmem:[%s772_s1 + $0xe8] sm:$0xff]  ;;  %s778_s21 = smov (!%p215_p3, %s480_s21), 1  ;;  %v582_v34 = vmov 0.0   ;;  %vm583_vm0 = vmmov 0   ;;  %v350_v54 = vstv %s349_s15 }
   0xd   : > { %v241_v1 = vld [vmem:[%s772_s1 + $0x78] sm:$0xff]  ;;  %493 = vmatprep.subr.mxu0 %v257_v0  ;;  %v240_v3 = vld [vmem:[%s772_s1 + $0x70] sm:$0xff]  ;;  %v239_v5 = vld [vmem:[%s772_s1 + $0x68] sm:$0xff]  ;;  %s492_s10 = sshll.u32 %s778_s21, 4  ;;  %539 = vmatprep.subr.mxu1 %v582_v34  ;;  %vm351_vm1 = vcmask 654336   ;;  %s487_s16 = sshll.u32 %s778_s21, 3 }
   0xe   : > { %494 = vmatpush3.msra.mxu0 %v241_v1  ;;  %v254_v6 = vld [vmem:[%s772_s1 + $0xe0] sm:$0xff]  ;;  %v253_v8 = vld [vmem:[%s772_s1 + $0xd8] sm:$0xff]  ;;  %s661_s19 = scalar_lea.vmem %s771_s0, %s492_s10  ;;  %v252_v10 = vld [vmem:[%s772_s1 + $0xd0] sm:$0xff]  ;;  %559 = vmatprep.mubr.msk.f32.mxu1 %vm583_vm0, %v582_v34  ;;  %s223_s22 = scalar_lea.vmem %s776_s5, %s487_s16  ;;  %vm425_vm2 = vcmask 64512  }
   0xf   : > { %495 = vmatprep.subr.mxu0 %v256_v2  ;;  %v238_v7 = vld [vmem:[%s772_s1 + $0x60] sm:$0xff]  ;;  %v237_v9 = vld [vmem:[%s772_s1 + $0x58] sm:$0xff]  ;;  %v236_v11 = vld [vmem:[%s772_s1 + $0x50] sm:$0xff] }
  0x10   : > { %496 = vmatpush3.msra.mxu0 %v240_v3  ;;  %v251_v12 = vld [vmem:[%s772_s1 + $0xc8] sm:$0xff]  ;;  %v250_v15 = vld [vmem:[%s772_s1 + $0xc0] sm:$0xff]  ;;  %v249_v17 = vld [vmem:[%s772_s1 + $0xb8] sm:$0xff] }
  0x11   : > { %497 = vmatprep.subr.mxu0 %v255_v4  ;;  %v225_v13 = vld [vmem:[%s661_s19 + $0x8] sm:$0xff]  ;;  %v234_v16 = vld [vmem:[%s772_s1 + $0x40] sm:$0xff]  ;;  %v233_v18 = vld [vmem:[%s772_s1 + $0x38] sm:$0xff] }
  0x12   : > { %498 = vmatpush3.msra.mxu0 %v239_v5  ;;  %v235_v14 = vld [vmem:[%s772_s1 + $0x48] sm:$0xff]  ;;  %329 = vmatprep.mubr.f32.mxu0 %v225_v13  ;;  %v248_v19 = vld [vmem:[%s772_s1 + $0xb0] sm:$0xff]  ;;  %v246_v23 = vld [vmem:[%s772_s1 + $0xa0] sm:$0xff] }
  0x13   : > { %499 = vmatprep.subr.mxu0 %v254_v6  ;;  %v232_v20 = vld [vmem:[%s772_s1 + $0x30] sm:$0xff]  ;;  %v247_v21 = vld [vmem:[%s772_s1 + $0xa8] sm:$0xff]  ;;  %v230_v24 = vld [vmem:[%s772_s1 + $0x20] sm:$0xff] }
  0x14   : > { %500 = vmatpush3.msra.mxu0 %v238_v7  ;;  %v231_v22 = vld [vmem:[%s772_s1 + $0x28] sm:$0xff]  ;;  %v245_v25 = vld [vmem:[%s772_s1 + $0x98] sm:$0xff]  ;;  %v244_v27 = vld [vmem:[%s772_s1 + $0x90] sm:$0xff] }
  0x15   : > { %501 = vmatprep.subr.mxu0 %v253_v8  ;;  %v229_v26 = vld [vmem:[%s772_s1 + $0x18] sm:$0xff]  ;;  %v228_v28 = vld [vmem:[%s772_s1 + $0x10] sm:$0xff]  ;;  %v243_v29 = vld [vmem:[%s772_s1 + $0x88] sm:$0xff] }
  0x16   : > { %502 = vmatpush3.msra.mxu0 %v237_v9  ;;  %v227_v30 = vld [vmem:[%s772_s1 + $0x8] sm:$0xff]  ;;  %v242_v31 = vld [vmem:[%s772_s1 + $0x80] sm:$0xff]  ;;  %v346_v37 = vld [vmem:[%s774_s3 + $0x38] sm:$0xff] }
  0x17   : > { %503 = vmatprep.subr.mxu0 %v252_v10  ;;  %v226_v32 = vld [vmem:[%s772_s1] sm:$0xff]  ;;  %v348_v35 = vld [vmem:[%s774_s3 + $0x48] sm:$0xff]  ;;  %v345_v38 = vld [vmem:[%s774_s3 + $0x30] sm:$0xff] }
  0x18   : > { %504 = vmatpush3.msra.mxu0 %v236_v11  ;;  %v224_v33 = vld [vmem:[%s661_s19] sm:$0xff]  ;;  %540 = vmatpush3.msra.mxu1 %v348_v35  ;;  %v344_v39 = vld [vmem:[%s774_s3 + $0x28] sm:$0xff]  ;;  %v342_v41 = vld [vmem:[%s774_s3 + $0x18] sm:$0xff] }
  0x19   : > { %505 = vmatprep.subr.mxu0 %v251_v12  ;;  %541 = vmatprep.subr.mxu1 %v582_v34  ;;  %v347_v36 = vld [vmem:[%s774_s3 + $0x40] sm:$0xff]  ;;  %v341_v42 = vld [vmem:[%s774_s3 + $0x10] sm:$0xff]  ;;  %v340_v43 = vld [vmem:[%s774_s3 + $0x8] sm:$0xff] }
  0x1a   : > { %506 = vmatpush3.msra.mxu0 %v235_v14  ;;  %542 = vmatpush3.msra.mxu1 %v347_v36  ;;  %v343_v40 = vld [vmem:[%s774_s3 + $0x20] sm:$0xff] }
  0x1b   : > { %507 = vmatprep.subr.mxu0 %v250_v15  ;;  %543 = vmatprep.subr.mxu1 %v582_v34  ;;  %v339_v44 = vld [vmem:[%s774_s3] sm:$0xff] }
  0x1c   : > { %508 = vmatpush3.msra.mxu0 %v234_v16  ;;  %544 = vmatpush3.msra.mxu1 %v346_v37  ;;  %v488_v46 = vld [vmem:[%s773_s2] ss:$0 sm:$0xff] }
  0x1d   : > { %509 = vmatprep.subr.mxu0 %v249_v17  ;;  %545 = vmatprep.subr.mxu1 %v582_v34 }
  0x1e   : > { %510 = vmatpush3.msra.mxu0 %v233_v18  ;;  %546 = vmatpush3.msra.mxu1 %v345_v38 }
  0x1f   : > { %511 = vmatprep.subr.mxu0 %v248_v19  ;;  %547 = vmatprep.subr.mxu1 %v582_v34 }
  0x20   : > { %512 = vmatpush3.msra.mxu0 %v232_v20  ;;  %548 = vmatpush3.msra.mxu1 %v344_v39 }
  0x21   : > { %513 = vmatprep.subr.mxu0 %v247_v21  ;;  %549 = vmatprep.subr.mxu1 %v582_v34 }
  0x22   : > { %514 = vmatpush3.msra.mxu0 %v231_v22  ;;  %550 = vmatpush3.msra.mxu1 %v343_v40 }
  0x23   : > { %515 = vmatprep.subr.mxu0 %v246_v23  ;;  %551 = vmatprep.subr.mxu1 %v582_v34 }
  0x24   : > { %516 = vmatpush3.msra.mxu0 %v230_v24  ;;  %552 = vmatpush3.msra.mxu1 %v342_v41 }
  0x25   : > { %517 = vmatprep.subr.mxu0 %v245_v25  ;;  %553 = vmatprep.subr.mxu1 %v582_v34 }
  0x26   : > { %518 = vmatpush3.msra.mxu0 %v229_v26  ;;  %554 = vmatpush3.msra.mxu1 %v341_v42 }
  0x27   : > { %519 = vmatprep.subr.mxu0 %v244_v27  ;;  %555 = vmatprep.subr.mxu1 %v582_v34 }
  0x28   : > { %520 = vmatpush3.msra.mxu0 %v228_v28  ;;  %556 = vmatpush3.msra.mxu1 %v340_v43 }
  0x29   : > { %521 = vmatprep.subr.mxu0 %v243_v29  ;;  %557 = vmatprep.subr.mxu1 %v582_v34 }
  0x2a   : > { %522 = vmatpush3.msra.mxu0 %v227_v30  ;;  %558 = vmatpush3.msra.mxu1 %v339_v44 }
  0x2b   : > { %523 = vmatprep.subr.mxu0 %v242_v31 }
  0x2c   : > { %524 = vmatpush3.msra.mxu0 %v226_v32 }
  0x2d   : > { %330 = vmatmul.mubr.f32.vlgmr.msra.gmra.mxu0 %v224_v33 }
  0xed   : > { %v525_v45 = vpop.f32.mrf.mxu0 }
  0xef   : > { %v526_v47 = vpop.f32.mrf.mxu0 }
  0xf0   : > { %v527_v48 = vadd.f32 %v526_v47, %v525_v45 }
  0xf2   : > { %v332_v49 = vadd.f32 %v527_v48, %v488_v46 }
  0xf4   : > { %v335_v50 = vmul.f32 0.5, %v332_v49 }
  0xf6   : > { %572 = vtanh.f32 %v335_v50 }
 0x103   : > { %v573_v51 = vpop.eup %572 }
 0x104   : > { %v337_v52 = vmul.f32 0.5, %v573_v51 }
 0x106   : > { %v338_v53 = vadd.f32 0.5, %v337_v52 }
 0x108   : > { %560 = vmatmul.mubr.msk.f32.vlgmr.msra.gmra.mxu1 %vm351_vm1, %v338_v53 }
 0x1c8   : > { %v421_v55 = vpop.f32.mrf.mxu1 }
 0x1c9   : > { %v422_v56 = vadd.f32 %v421_v55, %v350_v54 }
 0x1ca   : > { %v561_v57 = vpop.f32.mrf.mxu1 }
 0x1cb   : > { %426 = vst.msk [vmem:[%s223_s22] sm:$0xff] %vm425_vm2, %v422_v56 }
 0x1cc PF: > { %s16_s20 = sadd.s32 1, %s580_s20  }
 0x1cd   : > { %p13_p4 = scmp.ge.s32.totalorder %s16_s20, 4  }
 0x1cf   :  { %15 = sbr.rel (!%p13_p4) target bundleno = 2 (0x2), region = 70 }

</bundles_post_ra>
